<compile_context>
chip_gen: v7x
topology: tpu7x:2x2x1
jax: 0.10.0
libtpu: 0.0.40
codegen_flags: <defaults>
</compile_context>

<pallas_src>
import functools

import jax
import jax.numpy as jnp
from jax.experimental import pallas as pl
from jax.experimental.pallas import tpu as pltpu


def policy_mlp_kernel(xT_ref, w1_ref, b1_ref, w2_ref, b2_ref, oT_ref):
    # xT_ref: (I, TB)  w1_ref: (H, I)  b1_ref: (H, 1)
    # w2_ref: (O, H)   b2_ref: (O, 1)  oT_ref: (O, TB)
    # Always compute in f32 (supports bf16 activation storage on v6e/v7x).
    xT = xT_ref[...].astype(jnp.float32)

    # ---- linear1 + ReLU (MXU matmul, f32 accumulate), feature-major ----
    h = jnp.dot(w1_ref[...], xT, preferred_element_type=jnp.float32) + b1_ref[...]
    h = jnp.maximum(h, 0.0)                      # (H, TB)

    # ---- linear2 + ReLU ----
    y = jnp.dot(w2_ref[...], h, preferred_element_type=jnp.float32) + b2_ref[...]
    y = jnp.maximum(y, 0.0)                      # (O, TB)

    # ---- softmax over the class axis (axis=0 here == dim=1 in PyTorch) ----
    m = jnp.max(y, axis=0, keepdims=True)        # (1, TB)
    e = jnp.exp(y - m)
    s = jnp.sum(e, axis=0, keepdims=True)        # (1, TB)
    inv = pl.reciprocal(s, approx=True)          # EUP slot, frees VPU
    oT_ref[...] = (e * inv).astype(oT_ref.dtype)


@functools.partial(jax.jit,
                   static_argnames=("tb", "single_step_max", "act_dtype"))
def policy_model_forward(x, w1, b1, w2, b2, *,
                         tb=2048, single_step_max=4096,
                         act_dtype=jnp.float32):
    """x: (B, I) f32. Weights/biases in PyTorch nn.Linear layout:
    w1: (H, I), b1: (H,), w2: (O, H), b2: (O,). Returns (B, O) f32 probs.

    tb: batch-tile width used only when B > single_step_max (multiple of 128).
    act_dtype: HBM storage dtype for activations entering the kernel
      (jnp.bfloat16 is a good choice for very large B on v6e/v7x; keep f32
      on v5e). Compute is always f32 inside the kernel.
    """
    B, I = x.shape
    H = w1.shape[0]
    O = w2.shape[0]

    # Feature-major so the batch dimension sits on the 128-lane axis
    # (lane-dense loads & stores). Under jit this transpose fuses with
    # neighboring ops instead of being a standalone HBM pass.
    xT = x.T.astype(act_dtype)
    b1c = b1.reshape(H, 1)
    b2c = b2.reshape(O, 1)

    if B <= single_step_max:
        # Single grid step; block shapes equal full array extents, so the
        # (8, 128) divisibility constraint does not apply and no padding /
        # ragged handling is needed.
        tb_eff = B
        n_tiles = 1
        dim_sem = ("arbitrary",)
    else:
        # Large batch: big tiles (still < 1.5 MiB double-buffered even at
        # tb=8192, far under any generation's VMEM). Pallas handles the
        # ragged final block; softmax is per-column so the overhang is
        # harmless and never returned (out_shape is exactly (O, B)).
        tb_eff = tb
        n_tiles = pl.cdiv(B, tb_eff)
        # Megacore only pays once each TensorCore has several tiles of work.
        dim_sem = ("parallel",) if n_tiles >= 4 else ("arbitrary",)

    outT = pl.pallas_call(
        policy_mlp_kernel,
        out_shape=jax.ShapeDtypeStruct((O, B), jnp.float32),
        grid=(n_tiles,),
        in_specs=[
            pl.BlockSpec((I, tb_eff), lambda i: (0, i)),   # batch-tiled acts
            pl.BlockSpec((H, I), lambda i: (0, 0)),        # weights resident
            pl.BlockSpec((H, 1), lambda i: (0, 0)),
            pl.BlockSpec((O, H), lambda i: (0, 0)),
            pl.BlockSpec((O, 1), lambda i: (0, 0)),
        ],
        out_specs=pl.BlockSpec((O, tb_eff), lambda i: (0, i)),
        compiler_params=pltpu.CompilerParams(dimension_semantics=dim_sem),
    )(xT, w1, b1c, w2, b2c)

    return outT.T


def init_params(key, input_size, hidden_size, output_size):
    """PyTorch-style nn.Linear init: U(-1/sqrt(fan_in), 1/sqrt(fan_in)),
    stored in PyTorch layout (out_features, in_features)."""
    k1, k2, k3, k4 = jax.random.split(key, 4)
    bound1 = 1.0 / jnp.sqrt(input_size)
    bound2 = 1.0 / jnp.sqrt(hidden_size)
    w1 = jax.random.uniform(k1, (hidden_size, input_size), jnp.float32, -bound1, bound1)
    b1 = jax.random.uniform(k2, (hidden_size,), jnp.float32, -bound1, bound1)
    w2 = jax.random.uniform(k3, (output_size, hidden_size), jnp.float32, -bound2, bound2)
    b2 = jax.random.uniform(k4, (output_size,), jnp.float32, -bound2, bound2)
    return w1, b1, w2, b2


def _reference(x, w1, b1, w2, b2):
    h = jnp.maximum(x @ w1.T + b1, 0.0)
    y = jnp.maximum(h @ w2.T + b2, 0.0)
    return jax.nn.softmax(y, axis=1)


if __name__ == "__main__":
    # Snake behavior-cloner shapes: 13-feature state vector, 3 actions.
    batch = 300
    input_size = 13
    hidden_size = 32
    output_size = 3

    key = jax.random.PRNGKey(0)
    kx, kp = jax.random.split(key)
    x = jax.random.normal(kx, (batch, input_size), dtype=jnp.float32)
    w1, b1, w2, b2 = init_params(kp, input_size, hidden_size, output_size)

    ref = _reference(x, w1, b1, w2, b2)

    # --- Path 1: single-grid-step fast path (default, B <= 4096) ---
    out = policy_model_forward(x, w1, b1, w2, b2)
    out = jax.block_until_ready(out)
    assert out.shape == (batch, output_size)
    # approx reciprocal on the EUP -> allow a slightly looser tolerance.
    assert jnp.allclose(out, ref, atol=5e-3, rtol=5e-3)
    assert jnp.allclose(jnp.sum(out, axis=1), 1.0, atol=5e-3)
    assert jnp.all(jnp.argmax(out, axis=1) == jnp.argmax(ref, axis=1))

    # --- Path 2: batch-tiled path with a ragged final block (forced by
    # shrinking single_step_max so the same small inputs exercise it) ---
    out_tiled = policy_model_forward(x, w1, b1, w2, b2,
                                     tb=128, single_step_max=0)
    out_tiled = jax.block_until_ready(out_tiled)
    assert out_tiled.shape == (batch, output_size)
    assert jnp.allclose(out_tiled, ref, atol=5e-3, rtol=5e-3)
    assert jnp.all(jnp.argmax(out_tiled, axis=1) == jnp.argmax(ref, axis=1))

    print("KERNEL_OK")
</pallas_src>

<mosaic_0001>
module attributes {stable_mosaic.version = 11 : i64} {
  func.func @policy_mlp_kernel(%arg0: i32, %arg1: memref<13x300xf32, #tpu.memory_space<vmem>>, %arg2: memref<32x13xf32, #tpu.memory_space<vmem>>, %arg3: memref<32x1xf32, #tpu.memory_space<vmem>>, %arg4: memref<3x32xf32, #tpu.memory_space<vmem>>, %arg5: memref<3x1xf32, #tpu.memory_space<vmem>>, %arg6: memref<3x300xf32, #tpu.memory_space<vmem>>) attributes {dimension_semantics = [#tpu.dimension_semantics<arbitrary>], iteration_bounds = array<i64: 1>, scalar_prefetch = 0 : i64, scratch_operands = 0 : i64, tpu.core_type = #tpu.core_type<tc>, window_params = [{transform_indices = @transform_0, window_bounds = array<i64: 13, 300>}, {pipeline_mode = #tpu.pipeline_mode<synchronous>, transform_indices = @transform_1, window_bounds = array<i64: 32, 13>}, {pipeline_mode = #tpu.pipeline_mode<synchronous>, transform_indices = @transform_2, window_bounds = array<i64: 32, 1>}, {pipeline_mode = #tpu.pipeline_mode<synchronous>, transform_indices = @transform_3, window_bounds = array<i64: 3, 32>}, {pipeline_mode = #tpu.pipeline_mode<synchronous>, transform_indices = @transform_4, window_bounds = array<i64: 3, 1>}, {transform_indices = @transform_5, window_bounds = array<i64: 3, 300>}]} {
    %c0 = arith.constant 0 : index
    %c0_0 = arith.constant 0 : index
    %0 = vector.load %arg1[%c0, %c0_0] : memref<13x300xf32, #tpu.memory_space<vmem>>, vector<13x300xf32>
    %c0_1 = arith.constant 0 : index
    %c0_2 = arith.constant 0 : index
    %1 = vector.load %arg2[%c0_1, %c0_2] : memref<32x13xf32, #tpu.memory_space<vmem>>, vector<32x13xf32>
    %cst = arith.constant dense<0.000000e+00> : vector<32x300xf32>
    %2 = tpu.matmul %1, %0, %cst {dimension_numbers = #tpu.dot_dimension_numbers<[1], [0], [0], [1], [0, 0, 1, 1], [], []>} : vector<32x13xf32>, vector<13x300xf32>, vector<32x300xf32> -> vector<32x300xf32>
    %c0_3 = arith.constant 0 : index
    %c0_4 = arith.constant 0 : index
    %3 = vector.load %arg3[%c0_3, %c0_4] : memref<32x1xf32, #tpu.memory_space<vmem>>, vector<32x1xf32>
    %4 = vector.broadcast %3 : vector<32x1xf32> to vector<32x300xf32>
    %5 = arith.addf %2, %4 : vector<32x300xf32>
    %cst_5 = arith.constant 0.000000e+00 : f32
    %6 = vector.broadcast %cst_5 : f32 to vector<32x300xf32>
    %7 = arith.maximumf %5, %6 : vector<32x300xf32>
    %c0_6 = arith.constant 0 : index
    %c0_7 = arith.constant 0 : index
    %8 = vector.load %arg4[%c0_6, %c0_7] : memref<3x32xf32, #tpu.memory_space<vmem>>, vector<3x32xf32>
    %cst_8 = arith.constant dense<0.000000e+00> : vector<3x300xf32>
    %9 = tpu.matmul %8, %7, %cst_8 {dimension_numbers = #tpu.dot_dimension_numbers<[1], [0], [0], [1], [0, 0, 1, 1], [], []>} : vector<3x32xf32>, vector<32x300xf32>, vector<3x300xf32> -> vector<3x300xf32>
    %c0_9 = arith.constant 0 : index
    %c0_10 = arith.constant 0 : index
    %10 = vector.load %arg5[%c0_9, %c0_10] : memref<3x1xf32, #tpu.memory_space<vmem>>, vector<3x1xf32>
    %11 = vector.broadcast %10 : vector<3x1xf32> to vector<3x300xf32>
    %12 = arith.addf %9, %11 : vector<3x300xf32>
    %cst_11 = arith.constant 0.000000e+00 : f32
    %13 = vector.broadcast %cst_11 : f32 to vector<3x300xf32>
    %14 = arith.maximumf %12, %13 : vector<3x300xf32>
    %cst_12 = arith.constant dense<0xFF800000> : vector<300xf32>
    %15 = vector.multi_reduction <maximumf>, %14, %cst_12 [0] : vector<3x300xf32> to vector<300xf32>
    %16 = vector.shape_cast %15 : vector<300xf32> to vector<1x300xf32>
    %17 = vector.broadcast %16 : vector<1x300xf32> to vector<3x300xf32>
    %18 = arith.subf %14, %17 : vector<3x300xf32>
    %19 = math.exp %18 : vector<3x300xf32>
    %cst_13 = arith.constant dense<0.000000e+00> : vector<300xf32>
    %20 = vector.multi_reduction <add>, %19, %cst_13 [0] : vector<3x300xf32> to vector<300xf32>
    %21 = vector.shape_cast %20 : vector<300xf32> to vector<1x300xf32>
    %22 = tpu.reciprocal %21 {approx = true} : vector<1x300xf32> -> vector<1x300xf32>
    %23 = vector.broadcast %22 : vector<1x300xf32> to vector<3x300xf32>
    %24 = arith.mulf %19, %23 : vector<3x300xf32>
    %c0_14 = arith.constant 0 : index
    %c0_15 = arith.constant 0 : index
    %25 = vector.load %arg6[%c0_14, %c0_15] : memref<3x300xf32, #tpu.memory_space<vmem>>, vector<3x300xf32>
    tpu.vector_store %arg6[%c0_14, %c0_15], %24 {strides = array<i32>} : memref<3x300xf32, #tpu.memory_space<vmem>>, vector<3x300xf32>,
    return
  }
  func.func @transform_0(%arg0: i32) -> (i32, i32) {
    %c0_i32 = arith.constant 0 : i32
    %c0_i32_0 = arith.constant 0 : i32
    return %c0_i32, %arg0 : i32, i32
  }
  func.func @transform_1(%arg0: i32) -> (i32, i32) {
    %c0_i32 = arith.constant 0 : i32
    %c0_i32_0 = arith.constant 0 : i32
    %c0_i32_1 = arith.constant 0 : i32
    return %c0_i32, %c0_i32_0 : i32, i32
  }
  func.func @transform_2(%arg0: i32) -> (i32, i32) {
    %c0_i32 = arith.constant 0 : i32
    %c0_i32_0 = arith.constant 0 : i32
    %c0_i32_1 = arith.constant 0 : i32
    return %c0_i32, %c0_i32_0 : i32, i32
  }
  func.func @transform_3(%arg0: i32) -> (i32, i32) {
    %c0_i32 = arith.constant 0 : i32
    %c0_i32_0 = arith.constant 0 : i32
    %c0_i32_1 = arith.constant 0 : i32
    return %c0_i32, %c0_i32_0 : i32, i32
  }
  func.func @transform_4(%arg0: i32) -> (i32, i32) {
    %c0_i32 = arith.constant 0 : i32
    %c0_i32_0 = arith.constant 0 : i32
    %c0_i32_1 = arith.constant 0 : i32
    return %c0_i32, %c0_i32_0 : i32, i32
  }
  func.func @transform_5(%arg0: i32) -> (i32, i32) {
    %c0_i32 = arith.constant 0 : i32
    %c0_i32_0 = arith.constant 0 : i32
    return %c0_i32, %arg0 : i32, i32
  }
}

</mosaic_0001>

<bundles_post_ra>
// kernel: policy_model_forward.1
= control target key start
LH: loop header
LB: loop body
LE: loop exit
PB: predicated region body
PF: predicated region fallthrough
CT: control target
= control target key end

     0   :  { %vm68_vm0 = vcmask 1044480   ;;  %vm615_vm1 = vmmov 1   ;;  %v616_v7 = vmov 0.0   ;;  %vm55_vm3 = vcmask 105472   ;;  %s742_s0 = inlined_call_operand.vmem [shape: f32[13,300], index: 0, kind: input, shape index: {}]   ;;  %s743_s1 = inlined_call_operand.vmem [shape: f32[32,13], index: 1, kind: input, shape index: {}]   ;;  %s744_s2 = inlined_call_operand.vmem [shape: f32[32,1], index: 2, kind: input, shape index: {}]   ;;  %s745_s3 = inlined_call_operand.vmem [shape: f32[3,32], index: 3, kind: input, shape index: {}]   ;;  %s746_s4 = inlined_call_operand.vmem [shape: f32[3,1], index: 4, kind: input, shape index: {}]   ;;  %s747_s5 = inlined_call_operand.hbm [shape: f32[3,300], index: 5, kind: output, shape index: {}]  }
   0x1   :  { %v22_v0 = vld [vmem:[%s742_s0 + $0x8] sm:$0xff]  ;;  %v25_v1 = vld [vmem:[%s742_s0 + $0x20] sm:$0x1f]  ;;  %vm660_vm2 = vmpackc.low %vm68_vm0, %vm615_vm1  ;;  %142 = vmatprep.mubr.f32.mxu0 %v616_v7  ;;  %160 = vmatprep.mubr.f32.mxu1 %v616_v7  ;;  %v617_v14 = vmov 0  }
   0x2   :  { %v21_v2 = vld [vmem:[%s742_s0] sm:$0xff]  ;;  %v543_v3 = vpack.c.bf16 %v25_v1, %v22_v0  ;;  %v24_v5 = vld [vmem:[%s742_s0 + $0x18] sm:$0x1f]  ;;  %v23_v8 = vld [vmem:[%s742_s0 + $0x10] sm:$0xff]  ;;  %577 = vset.pattern.permute.xlu0 %v617_v14 }
   0x3   :  { %v546_v6 = vpack.c.bf16 %v24_v5, %v21_v2  ;;  %v26_v9 = vld [vmem:[%s742_s0 + $0x28] sm:$0x1f]  ;;  %v31_v11 = vld [vmem:[%s744_s2] sm:$0xff]  ;;  %v30_v13 = vld [vmem:[%s743_s1 + $0x18] sm:$0xff] }
   0x4   :  { %545 = vmatprep.subr.msk.bf16.mxu0 %vm660_vm2, %v543_v3  ;;  %569 = vmatprep.subr.msk.bf16.mxu1 %vm660_vm2, %v543_v3  ;;  %v549_v10 = vpack.c.bf16 %v26_v9, %v23_v8  ;;  %v27_v12 = vld [vmem:[%s743_s1] sm:$0xff] }
   0x5   :  { %548 = vmatpush1.bf16.msk.msra.mxu0 %vm660_vm2, %v546_v6  ;;  %570 = vmatpush1.bf16.msk.msra.mxu1 %vm660_vm2, %v546_v6 }
   0x6   :  { %551 = vmatprep.subr.msk.bf16.mxu1 %vm660_vm2, %v549_v10 }
   0x7   :  { %10 = vsyncpa [#allocation3], 0  ;;  %37 = vperm.xlu0 %577, %v31_v11   ;;  %578 = vset.pattern.permute.xlu1 %v617_v14  ;;  %v33_v15 = vld [vmem:[%s744_s2 + $0x10] sm:$0xff]  ;;  %v32_v16 = vld [vmem:[%s744_s2 + $0x8] sm:$0xff]  ;;  %v618_v21 = vmov 0.0|0.0   ;;  %vm619_vm4 = vmmov 0  }
   0x8   :  { %500 = vmatmul.mubr.msk.f32.vlgmr.msra.gmra.mrb[0].mxu0 %vm55_vm3, %v27_v12  ;;  %503 = vmatmul.mubr.msk.f32.vlgmr.msra.gmra.mrb[0].mxu1 %vm55_vm3, %v30_v13  ;;  %v28_v17 = vld [vmem:[%s743_s1 + $0x8] sm:$0xff]  ;;  %v29_v18 = vld [vmem:[%s743_s1 + $0x10] sm:$0xff]  ;;  %v34_v19 = vld [vmem:[%s744_s2 + $0x18] sm:$0xff]  ;;  %vm271_vm5 = vcmask 261120   ;;  %vm434_vm6 = vcmask 354304   ;;  %vm419_vm7 = vcmask 1042432  }
   0x9   :  { %554 = vmatpush3.bf16.msk.msra.mxu1 %vm660_vm2, %v549_v10  ;;  %148 = vmatprep.mubr.f32.mxu0 %v616_v7  ;;  %v265_v20 = vld [vmem:[%s746_s4] sm:$0x7] }
   0xa   :  { %526 = vmatprep.mubr.msk.f32.mxu1 %vm55_vm3, %v27_v12  ;;  %47 = vperm.xlu1 %578, %v33_v15   ;;  %v264_v4 = vld [vmem:[%s745_s3] sm:$0x7]  ;;  %s620_s3 = smov [#allocation2]  }
   0xb   :  { %42 = vperm.xlu0 %577, %v32_v16   ;;  %563 = vmatprep.subr.bf16.mxu0 %v618_v21  ;;  %s490_s4 = sshll.u32 %s620_s3, 4  ;;  %s491_s4 = int_to_ptr.vmem [resolvable:$true] %s490_s4 }
   0xc   :  { %501 = vmatmul.mubr.msk.f32.gmra.mrb[2].mxu0 %vm55_vm3, %v28_v17  ;;  %527 = vmatmul.mubr.msk.f32.vlgmr.msra.gmra.mrb[2].mxu1 %vm55_vm3, %v28_v17  ;;  %s591_s22 = scalar_lea.vmem %s491_s4, 192  ;;  %p596_p1 = scmp.lt.s32.totalorder %s491_s4, %s491_s4 }
   0xd   :  { %154 = vmatprep.mubr.f32.mxu0 %v616_v7  ;;  %529 = vmatprep.mubr.msk.f32.mxu1 %vm55_vm3, %v29_v18  ;;  %p592_p0 = scmp.ne.s32.totalorder %s491_s4, %s591_s22  ;;  %p597_p2 = scmp.lt.s32.totalorder %s591_s22, %s591_s22 }
   0xe   :  { %52 = vperm.xlu1 %578, %v34_v19  }
   0xf   :  { %268 = vperm.xlu0 %577, %v265_v20   ;;  %p598_p3 = por %p597_p2, %p596_p1 }
  0x10   :  { %502 = vmatmul.mubr.msk.f32.gmra.mrb[4].mxu0 %vm55_vm3, %v29_v18  ;;  %530 = vmatmul.mubr.msk.f32.gmra.mrb[4].mxu1 %vm55_vm3, %v30_v13 }
  0x11   :  { %339 = vmatprep.mubr.f32.mxu1 %v616_v7  ;;  %540 = vmatprep.mubr.msk.f32.mxu0 %vm619_vm4, %v616_v7  ;;  %p599_p4 = pnand %p598_p3, %p592_p0 }
  0x86   :  { %v38_v22 = vpop.permute.xlu0 %37 }
  0x89   :  { %v48_v23 = vpop.permute.xlu1 %47 }
  0x8a   :  { %v43_v28 = vpop.permute.xlu0 %42 }
  0x8d   :  { %v53_v29 = vpop.permute.xlu1 %52 }
  0x8e   :  { %v269_v5 = vpop.permute.xlu0 %268 }
  0xdb   :  { %v144_v24 = vpop.f32.mrb[0].mxu0  ;;  %v162_v25 = vpop.f32.mrb[0].mxu1 }
  0xdc   :  { %v146_v26 = vpop.f32.mrb[1].mxu0  ;;  %v164_v27 = vpop.f32.mrb[1].mxu1  ;;  %v145_v30 = vadd.f32 %v144_v24, %v38_v22  ;;  %v163_v41 = vadd.f32 %v162_v25, %v53_v29 }
  0xdd   :  { %v147_v31 = vadd.f32 %v146_v26, %v38_v22  ;;  %v165_v45 = vadd.f32 %v164_v27, %v53_v29 }
  0xde   :  { %v252_v40 = vmax.f32 %v145_v30, 0.0  ;;  %v261_v59 = vmax.f32 %v163_v41, 0.0 }
  0xdf   :  { %v150_v32 = vpop.f32.mrb[2].mxu0  ;;  %v528_v33 = vpop.f32.mrb[2].mxu1  ;;  %v253_v44 = vmax.f32 %v147_v31, 0.0  ;;  %v262_v62 = vmax.f32 %v165_v45, 0.0 }
  0xe0   :  { %v151_v34 = vadd.f32 %v150_v32, %v43_v28  ;;  %v239_v35 = vadd.f32 %v528_v33, %v43_v28  ;;  %v152_v36 = vpop.f32.mrb[3].mxu0  ;;  %v233_v37 = vpop.f32.mrb[3].mxu1 }
  0xe1   :  { %v153_v38 = vadd.f32 %v152_v36, %v43_v28  ;;  %v234_v39 = vadd.f32 %v233_v37, %v38_v22 }
  0xe2   :  { %v255_v42 = vmax.f32 %v151_v34, 0.0  ;;  %v257_v43 = vmax.f32 %v239_v35, 0.0 }
  0xe3   :  { %v256_v46 = vmax.f32 %v153_v38, 0.0  ;;  %v254_v47 = vmax.f32 %v234_v39, 0.0  ;;  %v156_v48 = vpop.f32.mrb[4].mxu0  ;;  %v531_v49 = vpop.f32.mrb[4].mxu1 }
  0xe4   :  { %v557_v50 = vpack.c.bf16 %v255_v42, %v252_v40  ;;  %v157_v51 = vadd.f32 %v156_v48, %v48_v23  ;;  %v249_v52 = vadd.f32 %v531_v49, %v53_v29  ;;  %v158_v53 = vpop.f32.mrb[5].mxu0  ;;  %v243_v54 = vpop.f32.mrb[5].mxu1 }
  0xe5   :  { %v555_v55 = vpack.c.bf16 %v256_v46, %v253_v44  ;;  %v564_v56 = vpack.c.bf16 %v257_v43, %v254_v47  ;;  %v159_v57 = vadd.f32 %v158_v53, %v48_v23  ;;  %v244_v58 = vadd.f32 %v243_v54, %v48_v23 }
  0xe6   :  { %v258_v60 = vmax.f32 %v157_v51, 0.0  ;;  %v263_v61 = vmax.f32 %v249_v52, 0.0 }
  0xe7   :  { %v259_v63 = vmax.f32 %v159_v57, 0.0  ;;  %v260_v0 = vmax.f32 %v244_v58, 0.0  ;;  %556 = vmatprep.subr.bf16.mxu1 %v555_v55  ;;  %565 = vmatpush3.bf16.msra.mxu0 %v564_v56 }
  0xe8   :  { %v561_v1 = vpack.c.bf16 %v261_v59, %v258_v60  ;;  %558 = vmatpush1.bf16.msra.mxu1 %v557_v50  ;;  %566 = vmatprep.subr.bf16.mxu0 %v618_v21 }
  0xe9   :  { %v559_v2 = vpack.c.bf16 %v262_v62, %v259_v63  ;;  %v567_v3 = vpack.c.bf16 %v263_v61, %v260_v0 }
  0xeb   :  { %560 = vmatprep.subr.bf16.mxu1 %v559_v2  ;;  %568 = vmatpush3.bf16.msra.mxu0 %v567_v3 }
  0xec   :  { %562 = vmatpush1.bf16.msra.mxu1 %v561_v1 }
  0xee   :  { %541 = vmatmul.mubr.msk.f32.vlgmr.msra.gmra.mrb[6].mxu0 %vm271_vm5, %v264_v4 }
  0xef   :  { %509 = vmatmul.mubr.msk.f32.vlgmr.msra.gmra.mrb[6].mxu1 %vm271_vm5, %v264_v4 }
 0x1c1   :  { %v412_v6 = vpop.f32.mrb[6].mxu0 }
 0x1c2   :  { %v413_v7 = vadd.f32 %v412_v6, %v269_v5  ;;  %v341_v8 = vpop.f32.mrb[6].mxu1  ;;  %v542_v9 = vpop.f32.mrb[7].mxu0 }
 0x1c3   :  { %v342_v10 = vadd.f32 %v341_v8, %v269_v5  ;;  %v343_v11 = vpop.f32.mrb[7].mxu1 }
 0x1c4   :  { %v418_v12 = vmax.f32 %v413_v7, 0.0  ;;  %v344_v13 = vadd.f32 %v343_v11, %v269_v5 }
 0x1c5   :  { %v416_v14 = vmax.f32 %v342_v10, 0.0 }
 0x1c6   :  { %v435_v15 = vsel %vm434_vm6, %v418_v12, -inf  ;;  %v417_v16 = vmax.f32 %v344_v13, 0.0 }
 0x1c7   :  { %v436_v17 = vrot.slane %v435_v15, 4  ;;  %v420_v18 = vsel %vm419_vm7, %v416_v14, -inf }
 0x1c8   :  { %v421_v19 = vrot.slane %v420_v18, 4  ;;  %v427_v20 = vsel %vm419_vm7, %v417_v16, -inf }
 0x1c9   :  { %v437_v21 = vmax.f32 %v435_v15, %v436_v17  ;;  %v428_v22 = vrot.slane %v427_v20, 4 }
 0x1ca   :  { %v422_v23 = vmax.f32 %v420_v18, %v421_v19 }
 0x1cb   :  { %v438_v24 = vrot.slane %v437_v21, 2  ;;  %v429_v25 = vmax.f32 %v427_v20, %v428_v22 }
 0x1cc   :  { %v423_v26 = vrot.slane %v422_v23, 2 }
 0x1cd   :  { %v439_v27 = vmax.f32 %v437_v21, %v438_v24  ;;  %v430_v28 = vrot.slane %v429_v25, 2 }
 0x1ce   :  { %v424_v29 = vmax.f32 %v422_v23, %v423_v26 }
 0x1cf   :  { %v440_v30 = vrot.slane %v439_v27, 1  ;;  %v431_v31 = vmax.f32 %v429_v25, %v430_v28 }
 0x1d0   :  { %v425_v32 = vrot.slane %v424_v29, 1 }
 0x1d1   :  { %v441_v33 = vmax.f32 %v439_v27, %v440_v30  ;;  %v432_v34 = vrot.slane %v431_v31, 1 }
 0x1d2   :  { %v426_v35 = vmax.f32 %v424_v29, %v425_v32 }
 0x1d3   :  { %v444_v36 = vsub.f32 %v418_v12, %v441_v33  ;;  %v433_v37 = vmax.f32 %v431_v31, %v432_v34 }
 0x1d4   :  { %v442_v38 = vsub.f32 %v416_v14, %v426_v35 }
 0x1d5   :  { %v449_v39 = vmul.f32 1.442695, %v444_v36  ;;  %v443_v40 = vsub.f32 %v417_v16, %v433_v37 }
 0x1d6   :  { %v445_v41 = vmul.f32 1.442695, %v442_v38 }
 0x1d7   :  { %579 = vpow2.f32 %v449_v39  ;;  %v447_v42 = vmul.f32 1.442695, %v443_v40 }
 0x1d8   :  { %581 = vpow2.f32 %v445_v41 }
 0x1d9   :  { %583 = vpow2.f32 %v447_v42 }
 0x1e1   :  { %v580_v43 = vpop.eup %579 }
 0x1e2   :  { %v582_v44 = vpop.eup %581  ;;  %v465_v45 = vsel %vm434_vm6, %v580_v43, 0.0 }
 0x1e3   :  { %v584_v46 = vpop.eup %583  ;;  %v466_v47 = vrot.slane %v465_v45, 4  ;;  %v451_v48 = vsel %vm419_vm7, %v582_v44, 0.0 }
 0x1e4   :  { %v452_v49 = vrot.slane %v451_v48, 4  ;;  %v458_v50 = vsel %vm419_vm7, %v584_v46, 0.0 }
 0x1e5   :  { %v467_v51 = vadd.f32 %v466_v47, %v465_v45  ;;  %v459_v52 = vrot.slane %v458_v50, 4 }
 0x1e6   :  { %v453_v53 = vadd.f32 %v452_v49, %v451_v48 }
 0x1e7   :  { %v468_v54 = vrot.slane %v467_v51, 2  ;;  %v460_v55 = vadd.f32 %v459_v52, %v458_v50 }
 0x1e8   :  { %v454_v56 = vrot.slane %v453_v53, 2 }
 0x1e9   :  { %v469_v57 = vadd.f32 %v468_v54, %v467_v51  ;;  %v461_v58 = vrot.slane %v460_v55, 2 }
 0x1ea   :  { %v455_v59 = vadd.f32 %v454_v56, %v453_v53 }
 0x1eb   :  { %v470_v60 = vrot.slane %v469_v57, 1  ;;  %v462_v61 = vadd.f32 %v461_v58, %v460_v55 }
 0x1ec   :  { %v456_v62 = vrot.slane %v455_v59, 1 }
 0x1ed   :  { %v471_v63 = vadd.f32 %v470_v60, %v469_v57  ;;  %v463_v0 = vrot.slane %v462_v61, 1 }
 0x1ee   :  { %v457_v1 = vadd.f32 %v456_v62, %v455_v59 }
 0x1ef   :  { %585 = vrcp.f32 %v471_v63  ;;  %v464_v2 = vadd.f32 %v463_v0, %v462_v61 }
 0x1f0   :  { %587 = vrcp.f32 %v457_v1 }
 0x1f1   :  { %589 = vrcp.f32 %v464_v2 }
 0x1f9   :  { %v586_v3 = vpop.eup %585 }
 0x1fa   :  { %v588_v4 = vpop.eup %587  ;;  %v477_v5 = vmul.f32 %v586_v3, %v580_v43 }
 0x1fb   :  { %v590_v6 = vpop.eup %589  ;;  %v475_v7 = vmul.f32 %v588_v4, %v582_v44 }
 0x1fc   :  { %v476_v8 = vmul.f32 %v590_v6, %v584_v46  ;;  %483 = vst.msk [vmem:[#allocation2 + $0x8] sm:$0x7] %vm434_vm6, %v477_v5 }
 0x1fe   :  { %v480_v9 = vcombine.low %v475_v7, %v476_v8 }
 0x200   :  { %482 = vst [vmem:[#allocation2] sm:$0x77] %v480_v9 }
 0x201   :  { %602 = shalt.err (!%p599_p4)
}
 0x202   :  { %s603_s25 = scalar_lea.hbm %s747_s5, 192 }
 0x203   :  { %p604_p5 = scmp.ne.s32.totalorder %s747_s5, %s603_s25  ;;  %p607_p6 = scmp.lt.u32.totalorder %s603_s25, %s747_s5 }
 0x205   :  { %p609_p7 = pnand %p607_p6, %p604_p5 }
 0x207   :  { %612 = shalt.err (!%p609_p7)
}
 0x208   :  { %493 = dma.vmem_to_hbm [thread:$0]  %s491_s4, 192, %s747_s5, [#allocation3]  }
 0x209   :  { %613 = dma.done.wait [#allocation3], 192  }
 0x20a   :  { %614 = vsyncadd [#allocation3], 4294967104 }
 0x20b   :  { %497 = vsyncpa [#allocation3], 1 }

</bundles_post_ra>
